<compile_context>
chip_gen: v6e
topology: v6e:2x2x1
jax: 0.10.0
libtpu: 0.0.40
codegen_flags: <defaults>
</compile_context>

<pallas_src>
import jax
import jax.numpy as jnp
from jax.experimental import pallas as pl
from jax.experimental.pallas import tpu as pltpu


def mlp_kernel(x_ref, w1_ref, b1_ref, w2_ref, b2_ref, w3_ref, b3_ref, o_ref):
    # fc1: (tb, K) @ (K, H) on the MXU, bf16 in, f32 accumulate.
    h1 = jnp.dot(x_ref[...], w1_ref[...], preferred_element_type=jnp.float32)
    h1 = jnp.maximum(h1 + b1_ref[...], 0.0)                      # f32 bias + ReLU (VPU)

    # fc2: (tb, H) @ (H, H); h1 read by the MXU as bf16, f32 accumulate.
    h2 = jnp.dot(h1.astype(w2_ref.dtype), w2_ref[...],
                 preferred_element_type=jnp.float32)
    h2 = jnp.maximum(h2 + b2_ref[...], 0.0)                      # f32 bias + ReLU (VPU)

    # fc3: out_dim == 1 -> elementwise multiply + lane reduction (VPU/XLU),
    # avoids a (hidden, 1) MXU matmul at the kernel tail.
    out = jnp.sum(h2 * w3_ref[...], axis=-1, keepdims=True) + b3_ref[...]
    o_ref[...] = out.astype(o_ref.dtype)


def mlp_classifier(x, w1, b1, w2, b2, w3, b3, *, tb=None):
    """x: (B, input_dim) bf16.  w1: (input_dim, hidden) bf16, w2: (hidden, hidden) bf16,
    w3: (out_dim, hidden) f32 (PyTorch fc3.weight layout), biases (1, n) f32.
    Returns (B, out_dim) f32."""
    B, K = x.shape
    hidden = w1.shape[1]
    out_dim = w3.shape[0]

    # One batch tile per grid step; weights are grid-invariant (fetched once).
    if tb is None:
        tb = B if B <= 128 else 128
    assert B % tb == 0, "batch must be divisible by the batch tile"
    n_b = B // tb

    full = lambda a: pl.BlockSpec(a.shape, lambda i: (0,) * a.ndim)

    flops = 2 * B * (K * hidden + hidden * hidden + hidden * out_dim)
    bytes_accessed = sum(int(a.size) * a.dtype.itemsize
                         for a in (x, w1, b1, w2, b2, w3, b3)) + B * out_dim * 4

    return pl.pallas_call(
        mlp_kernel,
        out_shape=jax.ShapeDtypeStruct((B, out_dim), jnp.float32),
        grid_spec=pltpu.PrefetchScalarGridSpec(
            num_scalar_prefetch=0,
            grid=(n_b,),
            in_specs=[
                pl.BlockSpec((tb, K), lambda i: (i, 0)),   # x: batch-tiled
                full(w1), full(b1), full(w2), full(b2), full(w3), full(b3),
            ],
            out_specs=pl.BlockSpec((tb, out_dim), lambda i: (i, 0)),
        ),
        compiler_params=pltpu.CompilerParams(dimension_semantics=("parallel",)),
        cost_estimate=pl.CostEstimate(flops=flops, transcendentals=0,
                                      bytes_accessed=bytes_accessed),
    )(x, w1, b1, w2, b2, w3, b3)


def reference_mlp(x, w1, b1, w2, b2, w3, b3):
    # Mirrors the kernel's numerics: bf16 operands upcast to f32, f32 accumulation,
    # h1 re-quantized to bf16 before fc2 (as the kernel does for the MXU).
    hp = jax.lax.Precision.HIGHEST
    xf, w1f, w2f, w3f = (a.astype(jnp.float32) for a in (x, w1, w2, w3))
    h1 = jnp.maximum(jnp.dot(xf, w1f, precision=hp) + b1, 0.0)
    h1 = h1.astype(jnp.bfloat16).astype(jnp.float32)
    h2 = jnp.maximum(jnp.dot(h1, w2f, precision=hp) + b2, 0.0)
    return jnp.dot(h2, w3f.T, precision=hp) + b3


if __name__ == "__main__":
    # Small shapes consistent with the module (hidden_dim is the module default 128).
    input_dim, hidden_dim, output_dim = 512, 128, 1
    batch = 16   # >= 16 so bf16 sublane packing is not half-wasted

    key = jax.random.PRNGKey(0)
    kx, k1, k2, k3, kb1, kb2, kb3 = jax.random.split(key, 7)

    # Deterministic parameter init (uniform, roughly matching nn.Linear scale).
    def uinit(k, shape, fan_in):
        bound = 1.0 / jnp.sqrt(fan_in)
        return jax.random.uniform(k, shape, jnp.float32, -bound, bound)

    x = jax.random.normal(kx, (batch, input_dim), jnp.float32)

    w1 = uinit(k1, (input_dim, hidden_dim), input_dim)       # fc1.weight^T
    b1 = uinit(kb1, (1, hidden_dim), input_dim)              # fc1.bias
    w2 = uinit(k2, (hidden_dim, hidden_dim), hidden_dim)     # fc2.weight^T
    b2 = uinit(kb2, (1, hidden_dim), hidden_dim)             # fc2.bias
    w3 = uinit(k3, (output_dim, hidden_dim), hidden_dim)     # fc3.weight (out, in)
    b3 = uinit(kb3, (1, output_dim), hidden_dim)             # fc3.bias

    # bf16 for the large operands (kernel is HBM-bound on w1); accumulation stays f32.
    # TODO(synk): on v6e, w1 could be int8 (native int MXU); on v7x, fp8 (no int MXU).
    x_bf16 = x.astype(jnp.bfloat16)
    w1_bf16 = w1.astype(jnp.bfloat16)
    w2_bf16 = w2.astype(jnp.bfloat16)

    out = mlp_classifier(x_bf16, w1_bf16, b1, w2_bf16, b2, w3, b3)
    out = jax.block_until_ready(out)

    ref = reference_mlp(x_bf16, w1_bf16, b1, w2_bf16, b2, w3, b3)
    assert out.shape == (batch, output_dim)
    assert jnp.allclose(out, ref, atol=1e-3, rtol=1e-3), "mismatch vs reference"

    print("KERNEL_OK")
</pallas_src>

<mosaic_0001>
module attributes {stable_mosaic.version = 11 : i64} {
  func.func @mlp_kernel(%arg0: i32, %arg1: memref<16x512xbf16, #tpu.memory_space<vmem>>, %arg2: memref<512x128xbf16, #tpu.memory_space<vmem>>, %arg3: memref<1x128xf32, #tpu.memory_space<vmem>>, %arg4: memref<128x128xbf16, #tpu.memory_space<vmem>>, %arg5: memref<1x128xf32, #tpu.memory_space<vmem>>, %arg6: memref<1x128xf32, #tpu.memory_space<vmem>>, %arg7: memref<1x1xf32, #tpu.memory_space<vmem>>, %arg8: memref<16x1xf32, #tpu.memory_space<vmem>>) attributes {dimension_semantics = [#tpu.dimension_semantics<parallel>], iteration_bounds = array<i64: 1>, scalar_prefetch = 0 : i64, scratch_operands = 0 : i64, tpu.core_type = #tpu.core_type<tc>, window_params = [{transform_indices = @transform_0, window_bounds = array<i64: 16, 512>}, {pipeline_mode = #tpu.pipeline_mode<synchronous>, transform_indices = @transform_1, window_bounds = array<i64: 512, 128>}, {pipeline_mode = #tpu.pipeline_mode<synchronous>, transform_indices = @transform_2, window_bounds = array<i64: 1, 128>}, {pipeline_mode = #tpu.pipeline_mode<synchronous>, transform_indices = @transform_3, window_bounds = array<i64: 128, 128>}, {pipeline_mode = #tpu.pipeline_mode<synchronous>, transform_indices = @transform_4, window_bounds = array<i64: 1, 128>}, {pipeline_mode = #tpu.pipeline_mode<synchronous>, transform_indices = @transform_5, window_bounds = array<i64: 1, 128>}, {pipeline_mode = #tpu.pipeline_mode<synchronous>, transform_indices = @transform_6, window_bounds = array<i64: 1, 1>}, {transform_indices = @transform_7, window_bounds = array<i64: 16, 1>}]} {
    %c0 = arith.constant 0 : index
    %c0_0 = arith.constant 0 : index
    %0 = vector.load %arg1[%c0, %c0_0] : memref<16x512xbf16, #tpu.memory_space<vmem>>, vector<16x512xbf16>
    %c0_1 = arith.constant 0 : index
    %c0_2 = arith.constant 0 : index
    %1 = vector.load %arg2[%c0_1, %c0_2] : memref<512x128xbf16, #tpu.memory_space<vmem>>, vector<512x128xbf16>
    %cst = arith.constant dense<0.000000e+00> : vector<16x128xf32>
    %2 = tpu.matmul %0, %1, %cst {dimension_numbers = #tpu.dot_dimension_numbers<[1], [0], [0], [1], [0, 0, 1, 1], [], []>} : vector<16x512xbf16>, vector<512x128xbf16>, vector<16x128xf32> -> vector<16x128xf32>
    %c0_3 = arith.constant 0 : index
    %c0_4 = arith.constant 0 : index
    %3 = vector.load %arg3[%c0_3, %c0_4] : memref<1x128xf32, #tpu.memory_space<vmem>>, vector<1x128xf32>
    %4 = vector.broadcast %3 : vector<1x128xf32> to vector<16x128xf32>
    %5 = arith.addf %2, %4 : vector<16x128xf32>
    %cst_5 = arith.constant 0.000000e+00 : f32
    %6 = vector.broadcast %cst_5 : f32 to vector<16x128xf32>
    %7 = arith.maximumf %5, %6 : vector<16x128xf32>
    %8 = arith.truncf %7 : vector<16x128xf32> to vector<16x128xbf16>
    %c0_6 = arith.constant 0 : index
    %c0_7 = arith.constant 0 : index
    %9 = vector.load %arg4[%c0_6, %c0_7] : memref<128x128xbf16, #tpu.memory_space<vmem>>, vector<128x128xbf16>
    %cst_8 = arith.constant dense<0.000000e+00> : vector<16x128xf32>
    %10 = tpu.matmul %8, %9, %cst_8 {dimension_numbers = #tpu.dot_dimension_numbers<[1], [0], [0], [1], [0, 0, 1, 1], [], []>} : vector<16x128xbf16>, vector<128x128xbf16>, vector<16x128xf32> -> vector<16x128xf32>
    %c0_9 = arith.constant 0 : index
    %c0_10 = arith.constant 0 : index
    %11 = vector.load %arg5[%c0_9, %c0_10] : memref<1x128xf32, #tpu.memory_space<vmem>>, vector<1x128xf32>
    %12 = vector.broadcast %11 : vector<1x128xf32> to vector<16x128xf32>
    %13 = arith.addf %10, %12 : vector<16x128xf32>
    %cst_11 = arith.constant 0.000000e+00 : f32
    %14 = vector.broadcast %cst_11 : f32 to vector<16x128xf32>
    %15 = arith.maximumf %13, %14 : vector<16x128xf32>
    %c0_12 = arith.constant 0 : index
    %c0_13 = arith.constant 0 : index
    %16 = vector.load %arg6[%c0_12, %c0_13] : memref<1x128xf32, #tpu.memory_space<vmem>>, vector<1x128xf32>
    %17 = vector.broadcast %16 : vector<1x128xf32> to vector<16x128xf32>
    %18 = arith.mulf %15, %17 : vector<16x128xf32>
    %cst_14 = arith.constant dense<0.000000e+00> : vector<16xf32>
    %19 = vector.multi_reduction <add>, %18, %cst_14 [1] : vector<16x128xf32> to vector<16xf32>
    %20 = vector.shape_cast %19 : vector<16xf32> to vector<16x1xf32>
    %c0_15 = arith.constant 0 : index
    %c0_16 = arith.constant 0 : index
    %21 = vector.load %arg7[%c0_15, %c0_16] : memref<1x1xf32, #tpu.memory_space<vmem>>, vector<1x1xf32>
    %22 = vector.broadcast %21 : vector<1x1xf32> to vector<16x1xf32>
    %23 = arith.addf %20, %22 : vector<16x1xf32>
    %c0_17 = arith.constant 0 : index
    %c0_18 = arith.constant 0 : index
    %24 = vector.load %arg8[%c0_17, %c0_18] : memref<16x1xf32, #tpu.memory_space<vmem>>, vector<16x1xf32>
    tpu.vector_store %arg8[%c0_17, %c0_18], %23 {strides = array<i32>} : memref<16x1xf32, #tpu.memory_space<vmem>>, vector<16x1xf32>,
    return
  }
  func.func @transform_0(%arg0: i32) -> (i32, i32) {
    %c0_i32 = arith.constant 0 : i32
    %c0_i32_0 = arith.constant 0 : i32
    return %arg0, %c0_i32 : i32, i32
  }
  func.func @transform_1(%arg0: i32) -> (i32, i32) {
    %c0_i32 = arith.constant 0 : i32
    %c0_i32_0 = arith.constant 0 : i32
    %c0_i32_1 = arith.constant 0 : i32
    return %c0_i32, %c0_i32_0 : i32, i32
  }
  func.func @transform_2(%arg0: i32) -> (i32, i32) {
    %c0_i32 = arith.constant 0 : i32
    %c0_i32_0 = arith.constant 0 : i32
    %c0_i32_1 = arith.constant 0 : i32
    return %c0_i32, %c0_i32_0 : i32, i32
  }
  func.func @transform_3(%arg0: i32) -> (i32, i32) {
    %c0_i32 = arith.constant 0 : i32
    %c0_i32_0 = arith.constant 0 : i32
    %c0_i32_1 = arith.constant 0 : i32
    return %c0_i32, %c0_i32_0 : i32, i32
  }
  func.func @transform_4(%arg0: i32) -> (i32, i32) {
    %c0_i32 = arith.constant 0 : i32
    %c0_i32_0 = arith.constant 0 : i32
    %c0_i32_1 = arith.constant 0 : i32
    return %c0_i32, %c0_i32_0 : i32, i32
  }
  func.func @transform_5(%arg0: i32) -> (i32, i32) {
    %c0_i32 = arith.constant 0 : i32
    %c0_i32_0 = arith.constant 0 : i32
    %c0_i32_1 = arith.constant 0 : i32
    return %c0_i32, %c0_i32_0 : i32, i32
  }
  func.func @transform_6(%arg0: i32) -> (i32, i32) {
    %c0_i32 = arith.constant 0 : i32
    %c0_i32_0 = arith.constant 0 : i32
    %c0_i32_1 = arith.constant 0 : i32
    return %c0_i32, %c0_i32_0 : i32, i32
  }
  func.func @transform_7(%arg0: i32) -> (i32, i32) {
    %c0_i32 = arith.constant 0 : i32
    %c0_i32_0 = arith.constant 0 : i32
    return %arg0, %c0_i32 : i32, i32
  }
}

</mosaic_0001>

<bundles_post_ra>
// kernel: tpu_custom_call.1
= control target key start
LH: loop header
LB: loop body
LE: loop exit
PB: predicated region body
PF: predicated region fallthrough
CT: control target
= control target key end

     0   :  { %s903_s0 = inlined_call_operand.hbm [shape: bf16[16,512], index: 0, kind: input, shape index: {}]   ;;  %s904_s1 = inlined_call_operand.hbm [shape: bf16[512,128], index: 1, kind: input, shape index: {}]   ;;  %s905_s2 = inlined_call_operand.vmem [shape: f32[1,128], index: 2, kind: input, shape index: {}]   ;;  %s906_s3 = inlined_call_operand.hbm [shape: bf16[128,128], index: 3, kind: input, shape index: {}]   ;;  %s907_s4 = inlined_call_operand.vmem [shape: f32[1,128], index: 4, kind: input, shape index: {}]   ;;  %s908_s5 = inlined_call_operand.vmem [shape: f32[1,128], index: 5, kind: input, shape index: {}]   ;;  %s909_s6 = inlined_call_operand.<no memory space> [shape: f32[1,1], index: 6, kind: input, shape index: {}]   ;;  %s910_s7 = inlined_call_operand.vmem [shape: f32[16,1], index: 7, kind: output, shape index: {}]  }
   0x1   :  { %v12_v0 = vstv %s909_s6 }
   0x2   :  { %13 = vst [vmem:[#allocation2] sm:$0x1] %v12_v0 }
   0x3   :  { %14 = vsyncpa [#allocation4], 0 }
   0x4   :  { %15 = vsyncpa [#allocation6], 0  ;;  %s827_s26 = smov [#allocation5]  }
   0x5   :  { %s33_s27 = sshll.u32 %s827_s26, 4  ;;  %s34_s27 = int_to_ptr.vmem [resolvable:$true] %s33_s27 }
   0x6   :  { %s771_s28 = scalar_lea.vmem %s34_s27, 4096  ;;  %p776_p1 = scmp.lt.s32.totalorder %s34_s27, %s34_s27 }
   0x7   :  { %p772_p0 = scmp.ne.s32.totalorder %s34_s27, %s771_s28  ;;  %p777_p2 = scmp.lt.s32.totalorder %s771_s28, %s771_s28 }
   0x9   :  { %p778_p3 = por %p777_p2, %p776_p1 }
   0xb   :  { %p779_p4 = pnand %p778_p3, %p772_p0 }
   0xd   :  { %782 = shalt.err (!%p779_p4)
}
   0xe   :  { %s828_s29 = smov 64   ;;  %s829_s30 = smov 4  }
   0xf   :  { %39 = dma.hbm_to_vmem [thread:$0]  %s904_s1, 4096, %s34_s27, [#allocation6], %s828_s29, %s828_s29, %s829_s30  }
  0x10   :  { %s830_s6 = smov [#allocation3]  }
  0x11   :  { %s21_s10 = sshll.u32 %s830_s6, 4  ;;  %s22_s10 = int_to_ptr.vmem [resolvable:$true] %s21_s10 }
  0x12   :  { %s791_s11 = scalar_lea.vmem %s22_s10, 512  ;;  %p796_p6 = scmp.lt.s32.totalorder %s22_s10, %s22_s10 }
  0x13   :  { %p792_p5 = scmp.ne.s32.totalorder %s22_s10, %s791_s11  ;;  %p797_p7 = scmp.lt.s32.totalorder %s791_s11, %s791_s11 }
  0x15   :  { %p798_p8 = por %p797_p7, %p796_p6 }
  0x17   :  { %p799_p9 = pnand %p798_p8, %p792_p5 }
  0x19   :  { %802 = shalt.err (!%p799_p9)
}
  0x1a   :  { %s831_s12 = smov 256   ;;  %s832_s13 = smov 16  }
  0x1b   :  { %27 = dma.hbm_to_vmem [thread:$0]  %s903_s0, 512, %s22_s10, [#allocation4], %s831_s12, %s831_s12, %s832_s13  }
  0x1c   :  { %s833_s16 = smov [#allocation7]  }
  0x1d   :  { %s47_s17 = sshll.u32 %s833_s16, 4  ;;  %s48_s17 = int_to_ptr.vmem [resolvable:$true] %s47_s17 }
  0x1e   :  { %s811_s1 = scalar_lea.vmem %s48_s17, 1024  ;;  %p816_p11 = scmp.lt.s32.totalorder %s48_s17, %s48_s17 }
  0x1f   :  { %p812_p10 = scmp.ne.s32.totalorder %s48_s17, %s811_s1  ;;  %p817_p12 = scmp.lt.s32.totalorder %s811_s1, %s811_s1 }
  0x21   :  { %p818_p13 = por %p817_p12, %p816_p11 }
  0x23   :  { %p819_p0 = pnand %p818_p13, %p812_p10 }
  0x25   :  { %822 = shalt.err (!%p819_p0)
}
  0x26   :  { %53 = dma.hbm_to_vmem [thread:$0]  %s906_s3, 1024, %s48_s17, [#allocation6], %s828_s29, %s828_s29, %s829_s30  }
  0x27   :  { %823 = dma.done.wait [#allocation4], 512  }
  0x28   :  { %824 = vsyncadd [#allocation4], 4294966784 }
  0x29   :  { %825 = dma.done.wait [#allocation6], 5120  }
  0x2a   :  { %826 = vsyncadd [#allocation6], 4294962176  ;;  %v717_v1 = vld [vmem:[#allocation5 + $0x78] sm:$0xff]   ;;  %v721_v5 = vld [vmem:[#allocation5 + $0x70] sm:$0xff]   ;;  %v834_v35 = vmov 0.0   ;;  %vm835_vm0 = vmmov 0  }
  0x2b   :  { %v718_v2 = vld [vmem:[#allocation5 + $0xf8] sm:$0xff]   ;;  %635 = vmatprep.subr.bf16.mxu0 %v717_v1  ;;  %v722_v6 = vld [vmem:[#allocation5 + $0xf0] sm:$0xff]   ;;  %v725_v9 = vld [vmem:[#allocation5 + $0x68] sm:$0xff]   ;;  %vm578_vm1 = vcmask 7168  }
  0x2c   :  { %v719_v3 = vld [vmem:[#allocation5 + $0x38] sm:$0xff]   ;;  %657 = vmatprep.subr.bf16.mxu1 %v718_v2  ;;  %v723_v7 = vld [vmem:[#allocation5 + $0x30] sm:$0xff]   ;;  %v726_v10 = vld [vmem:[#allocation5 + $0xe8] sm:$0xff]  }
  0x2d   :  { %v720_v4 = vld [vmem:[#allocation5 + $0xb8] sm:$0xff]   ;;  %636 = vmatpush3.bf16.msra.mxu0 %v719_v3  ;;  %v724_v8 = vld [vmem:[#allocation5 + $0xb0] sm:$0xff]   ;;  %v727_v11 = vld [vmem:[#allocation5 + $0x28] sm:$0xff]  }
  0x2e   :  { %658 = vmatpush3.bf16.msra.mxu1 %v720_v4  ;;  %637 = vmatprep.subr.bf16.mxu0 %v721_v5  ;;  %v728_v12 = vld [vmem:[#allocation5 + $0xa8] sm:$0xff]   ;;  %v729_v13 = vld [vmem:[#allocation5 + $0x60] sm:$0xff]   ;;  %v733_v17 = vld [vmem:[#allocation5 + $0x58] sm:$0xff]  }
  0x2f   :  { %659 = vmatprep.subr.bf16.mxu1 %v722_v6  ;;  %v730_v14 = vld [vmem:[#allocation5 + $0xe0] sm:$0xff]   ;;  %v734_v18 = vld [vmem:[#allocation5 + $0xd8] sm:$0xff]   ;;  %v737_v21 = vld [vmem:[#allocation5 + $0x50] sm:$0xff]  }
  0x30   :  { %v731_v15 = vld [vmem:[#allocation5 + $0x20] sm:$0xff]   ;;  %v735_v19 = vld [vmem:[#allocation5 + $0x18] sm:$0xff]   ;;  %v738_v22 = vld [vmem:[#allocation5 + $0xd0] sm:$0xff]  }
  0x31   :  { %638 = vmatpush3.bf16.msra.mxu0 %v723_v7  ;;  %v732_v16 = vld [vmem:[#allocation5 + $0xa0] sm:$0xff]   ;;  %v736_v20 = vld [vmem:[#allocation5 + $0x98] sm:$0xff]   ;;  %v739_v23 = vld [vmem:[#allocation5 + $0x10] sm:$0xff]  }
  0x32   :  { %660 = vmatpush3.bf16.msra.mxu1 %v724_v8  ;;  %639 = vmatprep.subr.bf16.mxu0 %v725_v9  ;;  %v740_v24 = vld [vmem:[#allocation5 + $0x90] sm:$0xff]   ;;  %v741_v25 = vld [vmem:[#allocation5 + $0x48] sm:$0xff]   ;;  %v745_v29 = vld [vmem:[#allocation5 + $0x40] sm:$0xff]  }
  0x33   :  { %661 = vmatprep.subr.bf16.mxu1 %v726_v10  ;;  %v742_v26 = vld [vmem:[#allocation5 + $0xc8] sm:$0xff]   ;;  %v746_v30 = vld [vmem:[#allocation5 + $0xc0] sm:$0xff]   ;;  %v755_v38 = vld [vmem:[#allocation7 + $0x38] sm:$0xff]  }
  0x34   :  { %v743_v27 = vld [vmem:[#allocation5 + $0x8] sm:$0xff]   ;;  %v747_v31 = vld [vmem:[#allocation5] sm:$0xff]   ;;  %v756_v39 = vld [vmem:[#allocation7 + $0x30] sm:$0xff]  }
  0x35   :  { %640 = vmatpush3.bf16.msra.mxu0 %v727_v11  ;;  %v744_v28 = vld [vmem:[#allocation5 + $0x88] sm:$0xff]   ;;  %v748_v32 = vld [vmem:[#allocation5 + $0x80] sm:$0xff]   ;;  %v759_v42 = vld [vmem:[#allocation7 + $0x18] sm:$0xff]  }
  0x36   :  { %662 = vmatpush3.bf16.msra.mxu1 %v728_v12  ;;  %641 = vmatprep.subr.bf16.mxu0 %v729_v13  ;;  %v749_v33 = vld [vmem:[#allocation3] ss:$16 sps:$4 sm:$0xff]   ;;  %v751_v34 = vld [vmem:[#allocation3 + $0x4] ss:$16 sps:$4 sm:$0xff]   ;;  %v752_v36 = vld [vmem:[#allocation3 + $0x8] ss:$16 sps:$4 sm:$0xff]  }
  0x37   :  { %663 = vmatprep.subr.bf16.mxu1 %v730_v14  ;;  %v754_v37 = vld [vmem:[#allocation3 + $0xc] ss:$16 sps:$4 sm:$0xff]   ;;  %389 = vmatprep.mubr.bf16.mxu0 %v751_v34  ;;  %v758_v41 = vld [vmem:[#allocation7 + $0x20] sm:$0xff]   ;;  %v760_v43 = vld [vmem:[#allocation7 + $0x10] sm:$0xff]  }
  0x38   :  { %430 = vmatprep.mubr.bf16.mxu1 %v754_v37  ;;  %v757_v40 = vld [vmem:[#allocation7 + $0x28] sm:$0xff]   ;;  %v762_v45 = vld [vmem:[#allocation7] sm:$0xff]   ;;  %v587_v48 = vld [vmem:[%s905_s2] ss:$0 sm:$0xff] }
  0x39   :  { %642 = vmatpush3.bf16.msra.mxu0 %v731_v15  ;;  %v761_v44 = vld [vmem:[#allocation7 + $0x8] sm:$0xff]   ;;  %v624_v2 = vld [vmem:[%s907_s4] ss:$0 sm:$0xff] }
  0x3a   :  { %664 = vmatpush3.bf16.msra.mxu1 %v732_v16  ;;  %643 = vmatprep.subr.bf16.mxu0 %v733_v17  ;;  %v633_v6 = vld [vmem:[%s908_s5] ss:$0 sm:$0xff] }
  0x3b   :  { %665 = vmatprep.subr.bf16.mxu1 %v734_v18  ;;  %v634_v14 = vld [vmem:[#allocation2] ss:$0 sm:$0xff] }
  0x3d   :  { %644 = vmatpush3.bf16.msra.mxu0 %v735_v19 }
  0x3e   :  { %666 = vmatpush3.bf16.msra.mxu1 %v736_v20  ;;  %645 = vmatprep.subr.bf16.mxu0 %v737_v21 }
  0x3f   :  { %667 = vmatprep.subr.bf16.mxu1 %v738_v22 }
  0x41   :  { %646 = vmatpush3.bf16.msra.mxu0 %v739_v23 }
  0x42   :  { %668 = vmatpush3.bf16.msra.mxu1 %v740_v24  ;;  %647 = vmatprep.subr.bf16.mxu0 %v741_v25 }
  0x43   :  { %669 = vmatprep.subr.bf16.mxu1 %v742_v26 }
  0x45   :  { %648 = vmatpush3.bf16.msra.mxu0 %v743_v27 }
  0x46   :  { %670 = vmatpush3.bf16.msra.mxu1 %v744_v28  ;;  %649 = vmatprep.subr.bf16.mxu0 %v745_v29 }
  0x47   :  { %671 = vmatprep.subr.bf16.mxu1 %v746_v30 }
  0x49   :  { %650 = vmatpush3.bf16.msra.mxu0 %v747_v31 }
  0x4a   :  { %672 = vmatpush3.bf16.msra.mxu1 %v748_v32  ;;  %688 = vmatprep.subr.bf16.mxu0 %v834_v35 }
  0x4c   :  { %390 = vmatmul.mubr.bf16.vlgmr.msra.gmra.mxu0 %v749_v33 }
  0x4d   :  { %431 = vmatmul.mubr.bf16.vlgmr.msra.gmra.mxu1 %v752_v36  ;;  %689 = vmatpush3.bf16.msra.mxu0 %v755_v38 }
  0x4e   :  { %690 = vmatprep.subr.bf16.mxu0 %v834_v35  ;;  %704 = vmatprep.mubr.msk.bf16.mxu0 %vm835_vm0, %v834_v35 }
  0x51   :  { %691 = vmatpush3.bf16.msra.mxu0 %v756_v39 }
  0x52   :  { %692 = vmatprep.subr.bf16.mxu0 %v834_v35 }
  0x55   :  { %693 = vmatpush3.bf16.msra.mxu0 %v757_v40 }
  0x56   :  { %694 = vmatprep.subr.bf16.mxu0 %v834_v35 }
  0x59   :  { %695 = vmatpush3.bf16.msra.mxu0 %v758_v41 }
  0x5a   :  { %696 = vmatprep.subr.bf16.mxu0 %v834_v35 }
  0x5d   :  { %697 = vmatpush3.bf16.msra.mxu0 %v759_v42 }
  0x5e   :  { %698 = vmatprep.subr.bf16.mxu0 %v834_v35 }
  0x61   :  { %699 = vmatpush3.bf16.msra.mxu0 %v760_v43 }
  0x62   :  { %700 = vmatprep.subr.bf16.mxu0 %v834_v35 }
  0x65   :  { %701 = vmatpush3.bf16.msra.mxu0 %v761_v44 }
  0x66   :  { %702 = vmatprep.subr.bf16.mxu0 %v834_v35 }
  0x69   :  { %703 = vmatpush3.bf16.msra.mxu0 %v762_v45 }
 0x10c   :  { %v651_v46 = vpop.f32.mrf.mxu0 }
 0x10d   :  { %v673_v47 = vpop.f32.mrf.mxu1 }
 0x10e   :  { %v652_v49 = vpop.f32.mrf.mxu0 }
 0x10f   :  { %v653_v50 = vadd.f32 %v652_v49, %v651_v46  ;;  %v674_v51 = vpop.f32.mrf.mxu1 }
 0x110   :  { %v654_v52 = vpop.f32.mrf.mxu0  ;;  %v675_v56 = vadd.f32 %v674_v51, %v673_v47 }
 0x111   :  { %v392_v53 = vadd.f32 %v653_v50, %v587_v48  ;;  %v676_v54 = vpop.f32.mrf.mxu1 }
 0x112   :  { %v655_v55 = vpop.f32.mrf.mxu0 }
 0x113   :  { %v656_v57 = vadd.f32 %v655_v55, %v654_v52  ;;  %v677_v58 = vpop.f32.mrf.mxu1  ;;  %v433_v59 = vadd.f32 %v675_v56, %v392_v53 }
 0x114   :  { %v678_v61 = vadd.f32 %v677_v58, %v676_v54 }
 0x115   :  { %v395_v60 = vadd.f32 %v656_v57, %v587_v48  ;;  %v439_v63 = vmax.f32 %v433_v59, 0.0 }
 0x117   :  { %v436_v62 = vadd.f32 %v678_v61, %v395_v60 }
 0x119   :  { %v440_v0 = vmax.f32 %v436_v62, 0.0 }
 0x11b   :  { %v441_v1 = vpack.c.bf16 %v440_v0, %v439_v63 }
 0x11d   :  { %705 = vmatmul.mubr.bf16.vlgmr.msra.gmra.mxu0 %v441_v1 }
 0x1dd   :  { %v547_v3 = vpop.f32.mrf.mxu0 }
 0x1de   :  { %v548_v4 = vadd.f32 %v624_v2, %v547_v3 }
 0x1df   :  { %v706_v5 = vpop.f32.mrf.mxu0 }
 0x1e0   :  { %v554_v7 = vmax.f32 %v548_v4, 0.0 }
 0x1e1   :  { %v550_v8 = vpop.f32.mrf.mxu0 }
 0x1e2   :  { %v551_v9 = vadd.f32 %v624_v2, %v550_v8  ;;  %v563_v10 = vmul.f32 %v633_v6, %v554_v7 }
 0x1e3   :  { %v707_v11 = vpop.f32.mrf.mxu0 }
 0x1e4   :  { %v555_v12 = vmax.f32 %v551_v9, 0.0  ;;  %565 = vadd.xlane.f32.xlu0 %v563_v10 }
 0x1e6   :  { %v564_v13 = vmul.f32 %v633_v6, %v555_v12 }
 0x1e8   :  { %567 = vadd.xlane.f32.xlu0 %v564_v13 }
 0x26d   :  { %v566_v15 = vpop.xlane.xlu0 %565 }
 0x26e   :  { %v576_v16 = vadd.f32 %v634_v14, %v566_v15 }
 0x270   :  { %579 = vst.msk [vmem:[%s910_s7] sm:$0xff] %vm578_vm1, %v576_v16 }
 0x271   :  { %v568_v17 = vpop.xlane.xlu0 %567 }
 0x272   :  { %v577_v18 = vadd.f32 %v634_v14, %v568_v17 }
 0x274   :  { %580 = vst.msk [vmem:[%s910_s7 + $0x8] sm:$0xff] %vm578_vm1, %v577_v18 }
 0x275   :  { %585 = vsyncpa [#allocation4], 1 }
 0x276   :  { %586 = vsyncpa [#allocation6], 1 }

</bundles_post_ra>
